<compile_context>
chip_gen: v7x
topology: tpu7x:2x2x1
jax: 0.10.0
libtpu: 0.0.40
codegen_flags: <defaults>
</compile_context>

<pallas_src>
import jax
import jax.numpy as jnp
from jax.experimental import pallas as pl
from jax.experimental.pallas import tpu as pltpu

_INV_SQRT2 = 0.7071067811865476
_SQRT_2_OVER_PI = 0.7978845608028654


def ffn_kernel(x_ref, w1_ref, b1_ref, w2_ref, b2_ref, o_ref):
    # Grid = (row_tiles, hidden_panels); hidden-panel axis (k) is the reduction.
    k = pl.program_id(1)

    @pl.when(k == 0)
    def _():
        o_ref[...] = jnp.zeros_like(o_ref)

    # fc1 panel: (tm, D) @ (D, th) on the MXU in bf16, f32 accumulation.
    h = jnp.dot(x_ref[...], w1_ref[...], preferred_element_type=jnp.float32)
    h = h + b1_ref[...]

    # tanh-approximate GELU (EUP transcendental, VALU-light).
    h = 0.5 * h * (1.0 + jnp.tanh(_SQRT_2_OVER_PI * (h + 0.044715 * h * h * h)))

    # Activation dropout = identity (eval mode).

    # fc2 partial product: (tm, th) @ (th, D); accumulate directly into the
    # resident f32 output block (no separate scratch accumulator).
    o_ref[...] += jnp.dot(h.astype(jnp.bfloat16), w2_ref[...],
                          preferred_element_type=jnp.float32)

    @pl.when(k == pl.num_programs(1) - 1)
    def _():
        o_ref[...] = o_ref[...] + b2_ref[...]


def _vmem_capacity_bytes():
    try:
        return int(pltpu.get_tpu_info().vmem_capacity_bytes)
    except Exception:
        return 64 * 1024 * 1024  # safe default (v7x per-TC VMEM)


def _pick_tile(n, target, align):
    """Largest multiple of `align` that divides n and is <= target (or n itself)."""
    if n <= target:
        return n
    t = min(target, n)
    t -= t % align
    while t >= align:
        if n % t == 0:
            return t
        t -= align
    return n


def _vmem_need_bytes(tm, th, d):
    # Double-buffered pipelined tiles + in-kernel intermediates (h f32, h bf16)
    # plus some headroom for layout temporaries.
    x_tiles = 2 * tm * d * 2           # bf16 x
    out_tiles = 2 * tm * d * 4         # f32 out (also the accumulator)
    w1 = 2 * d * th * 2                # bf16 W1 panels
    w2 = 2 * th * d * 2                # bf16 W2 panels
    biases = 2 * (th + d) * 4
    interm = tm * th * (4 + 2) + tm * d * 4
    return x_tiles + out_tiles + w1 + w2 + biases + interm


def _choose_tiles(rows, d, hidden, vmem_cap):
    big_vmem = vmem_cap >= 96 * 1024 * 1024     # v5e / v6e (128 MiB) vs v7x (64 MiB)
    tm_target = 1024 if big_vmem else 512
    th_target = 1024 if big_vmem else 512

    tm = _pick_tile(rows, tm_target, 8)
    th = _pick_tile(hidden, th_target, 128)

    budget = int(0.8 * vmem_cap)
    while _vmem_need_bytes(tm, th, d) > budget:
        if th >= 512 and (th // 2) % 128 == 0 and hidden % (th // 2) == 0:
            th //= 2
        elif tm >= 256 and (tm // 2) % 8 == 0 and rows % (tm // 2) == 0:
            tm //= 2
        elif th >= 256 and (th // 2) % 128 == 0 and hidden % (th // 2) == 0:
            th //= 2
        else:
            break

    # Prefer >= 2 row tiles so the "parallel" rows axis can split across the
    # two TensorCores on v7x (megacore).
    if rows // tm < 2:
        for cand in (tm // 2, tm // 4):
            if cand >= 8 and cand % 8 == 0 and rows % cand == 0 and rows // cand >= 2:
                tm = cand
                break
    return tm, th


def feed_forward(x, w1, b1, w2, b2):
    """x: (rows, D) f32.  w1: (D, H), b1: (H,), w2: (H, D), b2: (D,).

    Weights are stored pre-transposed relative to torch.nn.Linear.weight
    (i.e. w1 = fc1.weight.T) so the kernel computes plain x @ W + b.
    Returns f32 output of shape (rows, D).
    """
    rows, d = x.shape
    d_in, hidden = w1.shape
    assert d_in == d and w2.shape == (hidden, d)
    assert b1.shape == (hidden,) and b2.shape == (d,)

    vmem_cap = _vmem_capacity_bytes()
    tm, th = _choose_tiles(rows, d, hidden, vmem_cap)
    assert rows % tm == 0 and hidden % th == 0

    # bf16 activations & weights: halves DMA/VMEM traffic, runs MXU at bf16 peak.
    x_bf = x.astype(jnp.bfloat16)
    w1_bf = w1.astype(jnp.bfloat16)
    w2_bf = w2.astype(jnp.bfloat16)
    b1_2d = b1.reshape(1, hidden).astype(jnp.float32)
    b2_2d = b2.reshape(1, d).astype(jnp.float32)

    grid = (rows // tm, hidden // th)
    n_row_tiles = grid[0]

    vmem_need = _vmem_need_bytes(tm, th, d)
    vmem_limit = min(vmem_cap, max(int(1.25 * vmem_need), 32 * 1024 * 1024))

    cost = pl.CostEstimate(
        flops=4 * rows * d * hidden,            # two (rows x d x hidden) matmuls
        transcendentals=rows * hidden,          # tanh in GELU
        bytes_accessed=(rows * d * 2            # x read (bf16)
                        + rows * d * 4          # out write (f32)
                        + n_row_tiles * 2 * d * hidden * 2   # W1+W2 re-streamed per row tile
                        + n_row_tiles * (hidden + d) * 4),   # biases
    )

    return pl.pallas_call(
        ffn_kernel,
        out_shape=jax.ShapeDtypeStruct((rows, d), jnp.float32),
        grid_spec=pltpu.PrefetchScalarGridSpec(
            num_scalar_prefetch=0,
            grid=grid,
            in_specs=[
                pl.BlockSpec((tm, d), lambda i, k: (i, 0)),    # x row tile (resident over k)
                pl.BlockSpec((d, th), lambda i, k: (0, k)),    # W1 column panel
                pl.BlockSpec((1, th), lambda i, k: (0, k)),    # b1 panel
                pl.BlockSpec((th, d), lambda i, k: (k, 0)),    # W2 row panel
                pl.BlockSpec((1, d), lambda i, k: (0, 0)),     # b2 (invariant)
            ],
            out_specs=pl.BlockSpec((tm, d), lambda i, k: (i, 0)),
        ),
        compiler_params=pltpu.CompilerParams(
            dimension_semantics=("parallel", "arbitrary"),
            vmem_limit_bytes=vmem_limit,
        ),
        cost_estimate=cost,
    )(x_bf, w1_bf, b1_2d, w2_bf, b2_2d)


def feed_forward_ref(x, w1, b1, w2, b2):
    # Pure-JAX f32 reference with torch's default (erf) GELU.
    h = x @ w1 + b1.reshape(1, -1)
    h = 0.5 * h * (1.0 + jax.lax.erf(h * _INV_SQRT2))
    return h @ w2 + b2.reshape(1, -1)


if __name__ == "__main__":
    batch, seq, embed, expansion = 2, 8, 32, 4
    hidden = embed * expansion

    key = jax.random.PRNGKey(0)
    kx, kw1, kb1, kw2, kb2 = jax.random.split(key, 5)

    x = jax.random.normal(kx, (batch, seq, embed), dtype=jnp.float32)

    # Deterministic synthetic parameters (stored as (in, out), i.e. W.T).
    w1 = jax.random.normal(kw1, (embed, hidden), dtype=jnp.float32) * 0.02
    b1 = jax.random.normal(kb1, (hidden,), dtype=jnp.float32) * 0.01
    w2 = jax.random.normal(kw2, (hidden, embed), dtype=jnp.float32) * 0.02
    b2 = jax.random.normal(kb2, (embed,), dtype=jnp.float32) * 0.01

    x2d = x.reshape(batch * seq, embed)
    out = feed_forward(x2d, w1, b1, w2, b2)
    out = jax.block_until_ready(out)

    ref = feed_forward_ref(x2d, w1, b1, w2, b2)
    # bf16 matmul path + tanh-approx GELU -> widened tolerance vs f32/erf reference.
    assert jnp.allclose(out, ref, atol=1e-2, rtol=1e-2), "mismatch vs reference"

    out = out.reshape(batch, seq, embed)
    print("KERNEL_OK")
</pallas_src>

<mosaic_0001>
module attributes {stable_mosaic.version = 11 : i64} {
  func.func @ffn_kernel(%arg0: i32, %arg1: i32, %arg2: memref<8x32xbf16, #tpu.memory_space<vmem>>, %arg3: memref<32x128xbf16, #tpu.memory_space<vmem>>, %arg4: memref<1x128xf32, #tpu.memory_space<vmem>>, %arg5: memref<128x32xbf16, #tpu.memory_space<vmem>>, %arg6: memref<1x32xf32, #tpu.memory_space<vmem>>, %arg7: memref<8x32xf32, #tpu.memory_space<vmem>>) attributes {dimension_semantics = [#tpu.dimension_semantics<parallel>, #tpu.dimension_semantics<arbitrary>], iteration_bounds = array<i64: 2, 1>, scalar_prefetch = 0 : i64, scratch_operands = 0 : i64, tpu.core_type = #tpu.core_type<tc>, window_params = [{transform_indices = @transform_0, window_bounds = array<i64: 8, 32>}, {transform_indices = @transform_1, window_bounds = array<i64: 32, 128>}, {transform_indices = @transform_2, window_bounds = array<i64: 1, 128>}, {transform_indices = @transform_3, window_bounds = array<i64: 128, 32>}, {pipeline_mode = #tpu.pipeline_mode<synchronous>, transform_indices = @transform_4, window_bounds = array<i64: 1, 32>}, {transform_indices = @transform_5, window_bounds = array<i64: 8, 32>}]} {
    %c0_i32 = arith.constant 0 : i32
    %0 = arith.cmpi eq, %arg1, %c0_i32 : i32
    %1 = arith.extui %0 : i1 to i32
    %c0_i32_0 = arith.constant 0 : i32
    %2 = arith.cmpi ne, %1, %c0_i32_0 : i32
    scf.if %2 {
      %cst_19 = arith.constant 0.000000e+00 : f32
      %31 = vector.broadcast %cst_19 : f32 to vector<8x32xf32>
      %c0_20 = arith.constant 0 : index
      %c0_21 = arith.constant 0 : index
      %32 = vector.load %arg7[%c0_20, %c0_21] : memref<8x32xf32, #tpu.memory_space<vmem>>, vector<8x32xf32>
      tpu.vector_store %arg7[%c0_20, %c0_21], %31 {strides = array<i32>} : memref<8x32xf32, #tpu.memory_space<vmem>>, vector<8x32xf32>,
    } else {
    }
    %c0 = arith.constant 0 : index
    %c0_1 = arith.constant 0 : index
    %3 = vector.load %arg2[%c0, %c0_1] : memref<8x32xbf16, #tpu.memory_space<vmem>>, vector<8x32xbf16>
    %c0_2 = arith.constant 0 : index
    %c0_3 = arith.constant 0 : index
    %4 = vector.load %arg3[%c0_2, %c0_3] : memref<32x128xbf16, #tpu.memory_space<vmem>>, vector<32x128xbf16>
    %cst = arith.constant dense<0.000000e+00> : vector<8x128xf32>
    %5 = tpu.matmul %3, %4, %cst {dimension_numbers = #tpu.dot_dimension_numbers<[1], [0], [0], [1], [0, 0, 1, 1], [], []>} : vector<8x32xbf16>, vector<32x128xbf16>, vector<8x128xf32> -> vector<8x128xf32>
    %c0_4 = arith.constant 0 : index
    %c0_5 = arith.constant 0 : index
    %6 = vector.load %arg4[%c0_4, %c0_5] : memref<1x128xf32, #tpu.memory_space<vmem>>, vector<1x128xf32>
    %7 = vector.broadcast %6 : vector<1x128xf32> to vector<8x128xf32>
    %8 = arith.addf %5, %7 : vector<8x128xf32>
    %cst_6 = arith.constant 5.000000e-01 : f32
    %9 = vector.broadcast %cst_6 : f32 to vector<8x128xf32>
    %10 = arith.mulf %9, %8 : vector<8x128xf32>
    %cst_7 = arith.constant 4.471500e-02 : f32
    %11 = vector.broadcast %cst_7 : f32 to vector<8x128xf32>
    %12 = arith.mulf %11, %8 : vector<8x128xf32>
    %13 = arith.mulf %12, %8 : vector<8x128xf32>
    %14 = arith.mulf %13, %8 : vector<8x128xf32>
    %15 = arith.addf %8, %14 : vector<8x128xf32>
    %cst_8 = arith.constant 0.797884583 : f32
    %16 = vector.broadcast %cst_8 : f32 to vector<8x128xf32>
    %17 = arith.mulf %16, %15 : vector<8x128xf32>
    %18 = math.tanh %17 : vector<8x128xf32>
    %cst_9 = arith.constant 1.000000e+00 : f32
    %19 = vector.broadcast %cst_9 : f32 to vector<8x128xf32>
    %20 = arith.addf %19, %18 : vector<8x128xf32>
    %21 = arith.mulf %10, %20 : vector<8x128xf32>
    %c0_10 = arith.constant 0 : index
    %c0_11 = arith.constant 0 : index
    %22 = vector.load %arg7[%c0_10, %c0_11] : memref<8x32xf32, #tpu.memory_space<vmem>>, vector<8x32xf32>
    %23 = arith.truncf %21 : vector<8x128xf32> to vector<8x128xbf16>
    %c0_12 = arith.constant 0 : index
    %c0_13 = arith.constant 0 : index
    %24 = vector.load %arg5[%c0_12, %c0_13] : memref<128x32xbf16, #tpu.memory_space<vmem>>, vector<128x32xbf16>
    %cst_14 = arith.constant dense<0.000000e+00> : vector<8x32xf32>
    %25 = tpu.matmul %23, %24, %cst_14 {dimension_numbers = #tpu.dot_dimension_numbers<[1], [0], [0], [1], [0, 0, 1, 1], [], []>} : vector<8x128xbf16>, vector<128x32xbf16>, vector<8x32xf32> -> vector<8x32xf32>
    %26 = arith.addf %22, %25 : vector<8x32xf32>
    %c0_15 = arith.constant 0 : index
    %c0_16 = arith.constant 0 : index
    %27 = vector.load %arg7[%c0_15, %c0_16] : memref<8x32xf32, #tpu.memory_space<vmem>>, vector<8x32xf32>
    tpu.vector_store %arg7[%c0_15, %c0_16], %26 {strides = array<i32>} : memref<8x32xf32, #tpu.memory_space<vmem>>, vector<8x32xf32>,
    %c0_i32_17 = arith.constant 0 : i32
    %28 = arith.cmpi eq, %arg1, %c0_i32_17 : i32
    %29 = arith.extui %28 : i1 to i32
    %c0_i32_18 = arith.constant 0 : i32
    %30 = arith.cmpi ne, %29, %c0_i32_18 : i32
    scf.if %30 {
      %c0_19 = arith.constant 0 : index
      %c0_20 = arith.constant 0 : index
      %31 = vector.load %arg7[%c0_19, %c0_20] : memref<8x32xf32, #tpu.memory_space<vmem>>, vector<8x32xf32>
      %c0_21 = arith.constant 0 : index
      %c0_22 = arith.constant 0 : index
      %32 = vector.load %arg6[%c0_21, %c0_22] : memref<1x32xf32, #tpu.memory_space<vmem>>, vector<1x32xf32>
      %33 = vector.broadcast %32 : vector<1x32xf32> to vector<8x32xf32>
      %34 = arith.addf %31, %33 : vector<8x32xf32>
      %c0_23 = arith.constant 0 : index
      %c0_24 = arith.constant 0 : index
      %35 = vector.load %arg7[%c0_23, %c0_24] : memref<8x32xf32, #tpu.memory_space<vmem>>, vector<8x32xf32>
      tpu.vector_store %arg7[%c0_23, %c0_24], %34 {strides = array<i32>} : memref<8x32xf32, #tpu.memory_space<vmem>>, vector<8x32xf32>,
    } else {
    }
    return
  }
  func.func @transform_0(%arg0: i32, %arg1: i32) -> (i32, i32) {
    %c0_i32 = arith.constant 0 : i32
    %c0_i32_0 = arith.constant 0 : i32
    return %arg0, %c0_i32 : i32, i32
  }
  func.func @transform_1(%arg0: i32, %arg1: i32) -> (i32, i32) {
    %c0_i32 = arith.constant 0 : i32
    %c0_i32_0 = arith.constant 0 : i32
    return %c0_i32, %arg1 : i32, i32
  }
  func.func @transform_2(%arg0: i32, %arg1: i32) -> (i32, i32) {
    %c0_i32 = arith.constant 0 : i32
    %c0_i32_0 = arith.constant 0 : i32
    return %c0_i32, %arg1 : i32, i32
  }
  func.func @transform_3(%arg0: i32, %arg1: i32) -> (i32, i32) {
    %c0_i32 = arith.constant 0 : i32
    %c0_i32_0 = arith.constant 0 : i32
    return %arg1, %c0_i32 : i32, i32
  }
  func.func @transform_4(%arg0: i32, %arg1: i32) -> (i32, i32) {
    %c0_i32 = arith.constant 0 : i32
    %c0_i32_0 = arith.constant 0 : i32
    %c0_i32_1 = arith.constant 0 : i32
    return %c0_i32, %c0_i32_0 : i32, i32
  }
  func.func @transform_5(%arg0: i32, %arg1: i32) -> (i32, i32) {
    %c0_i32 = arith.constant 0 : i32
    %c0_i32_0 = arith.constant 0 : i32
    return %arg0, %c0_i32 : i32, i32
  }
}

</mosaic_0001>

<bundles_post_ra>
// kernel: tpu_custom_call.1
= control target key start
LH: loop header
LB: loop body
LE: loop exit
PB: predicated region body
PF: predicated region fallthrough
CT: control target
= control target key end

     0   :  { %10 = vsyncpa [#allocation3], 0  ;;  %s1026_s0 = inlined_call_operand.vmem [shape: bf16[16,32], index: 0, kind: input, shape index: {}]   ;;  %s1027_s1 = inlined_call_operand.vmem [shape: bf16[32,128], index: 1, kind: input, shape index: {}]   ;;  %s1028_s2 = inlined_call_operand.vmem [shape: f32[1,128], index: 2, kind: input, shape index: {}]   ;;  %s1029_s3 = inlined_call_operand.vmem [shape: bf16[128,32], index: 3, kind: input, shape index: {}]   ;;  %s1030_s4 = inlined_call_operand.vmem [shape: f32[1,32], index: 4, kind: input, shape index: {}]   ;;  %s1031_s5 = inlined_call_operand.hbm [shape: f32[16,32], index: 5, kind: output, shape index: {}]  }
   0x1   :  { %12 = vsyncpa [#allocation3 + $0x1], 0  ;;  %s862_s18 = smov 0   ;;  %s864_s19 = smov 0  }
   0x2   :  { %s866_s20 = smov 0   ;;  %s868_s21 = smov 0  }
   0x3   :  { %s870_s22 = smov 0   ;;  %s872_s23 = smov 0  }
   0x4 LB: > { %s613_s24 = sadd.s32 4294967295, %s827_s23   ;;  %s614_s25 = sadd.s32 4294967294, %s827_s23   ;;  %s827_s23 = sphi %s872_s23, %s18_s23   ;;  %s823_s22 = sphi %s870_s22, %s1038_s22   ;;  %s819_s21 = sphi %s868_s21, %s1037_s21   ;;  %s815_s20 = sphi %s866_s20, %s1036_s20   ;;  %s811_s19 = sphi %s864_s19, %s1035_s19   ;;  %s807_s18 = sphi %s862_s18, %s1034_s18  }
   0x5   : > { %s30_s26 = sadd.s32 1, %s823_s22  ;;  %s162_s27 = sadd.s32 1, %s815_s20 }
   0x6   : > { %p32_p0 = scmp.ge.s32.totalorder %s30_s26, 2  ;;  %p172_p1 = scmp.ne.s32.totalorder %s815_s20, %s811_s19 }
   0x7   : > { %p173_p2 = scmp.eq.s32.totalorder %s613_s24, 1  ;;  %p178_p3 = scmp.ne.s32.totalorder %s811_s19, %s807_s18 }
   0x8   : > { %s1040_s26 = smov (%p32_p0, %s30_s26), 0  ;;  %p179_p5 = scmp.eq.s32.totalorder %s614_s25, 1 }
   0x9   : > { %p902_p4 = por %p173_p2, %p172_p1  ;;  %s159_s29 = ssub.s32 %s823_s22, %s1040_s26 }
   0xa   : > { %p620_p6 = scmp.ge.s32.totalorder %s827_s23, 1  ;;  %p160_p7 = scmp.eq.s32.totalorder %s159_s29, 0 }
   0xb   : > { %p909_p8 = por %p179_p5, %p178_p3  ;;  %p229_p9 = scmp.lt.s32.totalorder %s827_s23, 3 }
   0xc   : > { %s915_s6 = scalar_select %p160_p7, %s815_s20, %s162_s27  }
   0xd   : > { %p230_p10 = pnand %p620_p6, %p229_p9 }
   0xe   : > { %v737_v0 = vld [vmem:[%s1027_s1] sm:$0xff] (!%p230_p10)   ;;  %v829_v1 = vmov (!%p230_p10), 0.0   ;;  %v738_v2 = vld [vmem:[%s1027_s1 + $0x8] sm:$0xff] (!%p230_p10)   ;;  %vm830_vm0 = vmmov (!%p230_p10), 0   ;;  %p268_p11 = scmp.lt.s32.totalorder (!%p230_p10), %s819_s21, 1  ;;  %vm290_vm1 = vcmask (!%p230_p10), 261120  }
   0xf   : > { %233 = sbr.rel (%p230_p10) target bundleno = 506 (0x1fa), region = 40  ;;  %652 = vmatprep.subr.bf16.mxu0 (!%p230_p10), %v829_v1  ;;  %660 = vmatprep.subr.bf16.mxu1 (!%p230_p10), %v829_v1  ;;  %v739_v3 = vld [vmem:[%s1029_s3] sm:$0xff] (!%p230_p10)   ;;  %v740_v5 = vld [vmem:[%s1029_s3 + $0x8] sm:$0xff] (!%p230_p10)   ;;  %v741_v6 = vld [vmem:[%s1029_s3 + $0x10] sm:$0xff] (!%p230_p10)   ;;  %s637_s9 = sshll.u32 (!%p230_p10), %s819_s21, 7 }
  0x10   : > { %653 = vmatpush3.bf16.msra.mxu0 (!%p230_p10), %v737_v0  ;;  %656 = vmatprep.mubr.msk.bf16.mxu0 (!%p230_p10), %vm830_vm0, %v829_v1  ;;  %v742_v7 = vld [vmem:[%s1029_s3 + $0x18] sm:$0xff] (!%p230_p10)   ;;  %v743_v8 = vld [vmem:[%s1029_s3 + $0x20] sm:$0xff] (!%p230_p10)   ;;  %v744_v9 = vld [vmem:[%s1029_s3 + $0x28] sm:$0xff] (!%p230_p10)  }
  0x11   : > { %654 = vmatprep.subr.bf16.mxu0 (!%p230_p10), %v829_v1  ;;  %676 = vmatprep.mubr.msk.bf16.mxu1 (!%p230_p10), %vm830_vm0, %v829_v1  ;;  %v745_v10 = vld [vmem:[%s1029_s3 + $0x30] sm:$0xff] (!%p230_p10)   ;;  %v746_v11 = vld [vmem:[%s1029_s3 + $0x38] sm:$0xff] (!%p230_p10)   ;;  %v623_v12 = vld [vmem:[%s1028_s2] ss:$0 sm:$0xff] (!%p230_p10) }
  0x12   : > { %661 = vmatpush3.bf16.msra.mxu1 (!%p230_p10), %v739_v3  ;;  %v635_v34 = vld [vmem:[%s1030_s4] ss:$0 sm:$0xff] (!%p230_p10) }
  0x13   : > { %662 = vmatprep.subr.bf16.mxu1 (!%p230_p10), %v829_v1 }
  0x14   : > { %655 = vmatpush3.bf16.msra.mxu0 (!%p230_p10), %v738_v2 }
  0x16   : > { %s269_s13 = scalar_select %p268_p11, %s819_s21, 1  ;;  %663 = vmatpush3.bf16.msra.mxu1 %v740_v5 }
  0x17   : > { %664 = vmatprep.subr.bf16.mxu1 %v829_v1  ;;  %s831_s21 = smov [#allocation2]  }
  0x18   : > { %s622_s14 = sshll.u32 %s269_s13, 2  ;;  %s975_s13 = scalar_lea.hbm %s1031_s5, %s637_s9 }
  0x19   : > { %s271_s17 = scalar_lea.vmem %s1026_s0, %s622_s14  ;;  %s753_s16 = sshll.u32 %s831_s21, 4  ;;  %s754_s16 = int_to_ptr.vmem [resolvable:$false] %s753_s16 }
  0x1a   : > { %v292_v4 = vld [vmem:[%s271_s17] sm:$0xf]  ;;  %665 = vmatpush3.bf16.msra.mxu1 %v741_v6  ;;  %s265_s17 = sand.u32 1, %s811_s19  }
  0x1b   : > { %657 = vmatmul.mubr.msk.bf16.vlgmr.msra.gmra.mrb[0].mxu0 %vm290_vm1, %v292_v4  ;;  %666 = vmatprep.subr.bf16.mxu1 %v829_v1  ;;  %s621_s24 = sshll.u32 %s265_s17, 3  ;;  %s491_s14 = scalar_lea.sflag [#allocation3], %s265_s17 }
  0x1c   : > { %s956_s25 = scalar_lea.vmem [#allocation2], %s621_s24  ;;  %s755_s24 = scalar_lea.vmem %s754_s16, 256 }
  0x1d   : > { %291 = vst.msk [vmem:[%s956_s25] sm:$0xff] %vm290_vm1, %v829_v1  ;;  %s504_s10 = sshll.u32 %s956_s25, 4  ;;  %s977_s10 = int_to_ptr.vmem [resolvable:$true] %s504_s10 }
  0x1e   : > { %667 = vmatpush3.bf16.msra.mxu1 %v742_v7  ;;  %s749_s15 = scalar_lea.vmem %s977_s10, 128  ;;  %p756_p1 = scmp.lt.s32.totalorder %s977_s10, %s754_s16 }
  0x1f   : > { %668 = vmatprep.subr.bf16.mxu1 %v829_v1  ;;  %p750_p12 = scmp.ne.s32.totalorder %s977_s10, %s749_s15  ;;  %p757_p2 = scmp.lt.s32.totalorder %s755_s24, %s749_s15 }
  0x21   : > { %p751_p13 = pnand %p750_p12, %p902_p4  ;;  %p758_p3 = por %p757_p2, %p756_p1 }
  0x22   : > { %669 = vmatpush3.bf16.msra.mxu1 %v743_v8 }
  0x23   : > { %670 = vmatprep.subr.bf16.mxu1 %v829_v1  ;;  %p752_p0 = pneg %p751_p13 }
  0x24   : > { %v369_v28 = vld [vmem:[%s956_s25] sm:$0xff] }
  0x25   : > { %p759_p5 = pnand %p758_p3, %p752_p0 }
  0x26   : > { %671 = vmatpush3.bf16.msra.mxu1 %v744_v9 }
  0x27   : > { %672 = vmatprep.subr.bf16.mxu1 %v829_v1 }
  0x2a   : > { %673 = vmatpush3.bf16.msra.mxu1 %v745_v10 }
  0x2b   : > { %674 = vmatprep.subr.bf16.mxu1 %v829_v1 }
  0x2e   : > { %675 = vmatpush3.bf16.msra.mxu1 %v746_v11 }
  0xee   : > { %v354_v13 = vpop.f32.mrb[0].mxu0 }
  0xef   : > { %v355_v14 = vadd.f32 %v623_v12, %v354_v13  ;;  %v658_v15 = vpop.f32.mrb[1].mxu0 }
  0xf0   : > { %v357_v16 = vpop.f32.mrb[2].mxu0 }
  0xf1   : > { %v361_v17 = vmul.f32 0.044715, %v355_v14  ;;  %v659_v18 = vpop.f32.mrb[3].mxu0  ;;  %v360_v24 = vmul.f32 0.5, %v355_v14 }
  0xf3   : > { %v362_v19 = vmul.f32 %v361_v17, %v355_v14 }
  0xf5   : > { %v363_v20 = vmul.f32 %v362_v19, %v355_v14 }
  0xf7   : > { %v364_v21 = vadd.f32 %v363_v20, %v355_v14 }
  0xf9   : > { %v365_v22 = vmul.f32 0.7978846, %v364_v21 }
  0xfb   : > { %747 = vtanh.f32 %v365_v22 }
 0x105   : > { %v748_v23 = vpop.eup %747 }
 0x106   : > { %v367_v25 = vadd.f32 1.0, %v748_v23 }
 0x108   : > { %v368_v26 = vmul.f32 %v367_v25, %v360_v24 }
 0x10a   : > { %v370_v27 = vpack.c.bf16 %v368_v26, %v368_v26 }
 0x10c   : > { %677 = vmatmul.mubr.bf16.vlgmr.msra.gmra.mrb[0].mxu1 %v370_v27 }
 0x1df   : > { %v469_v29 = vpop.f32.mrb[0].mxu1 }
 0x1e0   : > { %v475_v30 = vadd.f32 %v469_v29, %v369_v28  ;;  %v678_v31 = vpop.f32.mrb[1].mxu1 }
 0x1e1   : > { %v472_v32 = vpop.f32.mrb[2].mxu1 }
 0x1e2   : > { %476 = vst.msk [vmem:[%s956_s25] sm:$0xff] %vm290_vm1, %v475_v30  ;;  %v679_v33 = vpop.f32.mrb[3].mxu1 }
 0x1e9   : > { %v480_v35 = vld [vmem:[%s956_s25] sm:$0xff] }
 0x1ea   : > { %v488_v36 = vadd.f32 %v635_v34, %v480_v35 }
 0x1ec   : > { %489 = vst.msk [vmem:[%s956_s25] sm:$0xff] %vm290_vm1, %v488_v36 }
 0x1ed   : > { %762 = shalt.err (!%p759_p5)
}
 0x1ee   : > { %s763_s17 = scalar_lea.hbm %s975_s13, 128  ;;  %s767_s29 = scalar_lea.hbm %s1031_s5, 256 }
 0x1ef   : > { %p764_p6 = scmp.ne.s32.totalorder %s975_s13, %s763_s17  ;;  %p768_p10 = scmp.lt.u32.totalorder %s975_s13, %s1031_s5 }
 0x1f0   : > { %p769_p11 = scmp.lt.u32.totalorder %s767_s29, %s763_s17  ;;  %p771_p13 = scmp.lt.u32.totalorder %s763_s17, %s975_s13 }
 0x1f1   : > { %p765_p7 = pnand %p764_p6, %p902_p4 }
 0x1f2   : > { %p770_p12 = por %p769_p11, %p768_p10 }
 0x1f3   : > { %p766_p9 = pneg %p765_p7 }
 0x1f4   : > { %p772_p0 = por %p771_p13, %p770_p12 }
 0x1f6   : > { %p773_p1 = pnand %p772_p0, %p766_p9 }
 0x1f8   : > { %776 = shalt.err (!%p773_p1)
}
 0x1f9   : > { %680 = dma.vmem_to_hbm [thread:$0]  (%p902_p4), %s977_s10, 128, %s975_s13, %s491_s14  }
 0x1fa PF: > { %p686_p2 = scmp.ge.s32.totalorder %s827_s23, 2  ;;  %s516_s9 = sand.u32 1, %s807_s18  }
 0x1fb   : > { %s517_s11 = scalar_lea.sflag [#allocation3], %s516_s9 }
 0x1fc   : > { %p683_p3 = pnand %p686_p2, %p909_p8 }
 0x1fe   : > { %802 = dma.done.wait (!%p683_p3), %s517_s11, 128  }
 0x1ff   : > { %804 = vsyncadd (!%p683_p3), %s517_s11, 4294967168  ;;  %s18_s23 = sadd.s32 1, %s827_s23   ;;  %s1034_s18 = smov %s811_s19 }
 0x200   : > { %p15_p5 = scmp.ge.s32.totalorder %s18_s23, 4   ;;  %s1035_s19 = smov %s815_s20 }
 0x201   : > { %s1036_s20 = smov %s915_s6  ;;  %s1037_s21 = smov %s823_s22 }
 0x202   : > { %s1038_s22 = smov %s1040_s26  ;;  %17 = sbr.rel (!%p15_p5) target bundleno = 4 (0x4), region = 92 }
 0x209   :  { %522 = vsyncpa [#allocation3], 1 }
 0x20a   :  { %524 = vsyncpa [#allocation3 + $0x1], 1 }

</bundles_post_ra>
